<compile_context>
chip_gen: v7x
topology: tpu7x:2x2x1
jax: 0.10.0
libtpu: 0.0.40
codegen_flags: <defaults>
</compile_context>

<pallas_src>
import jax
import jax.numpy as jnp
from jax.experimental import pallas as pl
from jax.experimental.pallas import tpu as pltpu


def _make_trim_kernel(d1, d2):
    def kernel(x_ref, o_ref):
        # x_ref: (B, in_rows, in_cols) slab batch; o_ref: (B, d1, d2).
        # When the input block was already shrunk to (B, d1, d2) this static
        # slice is a no-op; otherwise it is the in-VMEM crop.
        o_ref[...] = x_ref[:, :d1, :d2]
    return kernel


def trim(x, d1, d2, *, vmem_block_budget_bytes=8 << 20):
    """Pallas equivalent of Trim.forward: x[:, :, :d1, :d2] (NCHW)."""
    N, C, H, W = x.shape
    assert 0 < d1 <= H and 0 < d2 <= W, "trim sizes must fit inside spatial dims"

    NC = N * C
    x2 = x.reshape(NC, H, W)  # free reshape; collapses the (N, C) grid

    # Only fetch the trimmed bytes when the (8,128) block rule allows a
    # partial window (divisible by the native tile, or full extent).
    in_rows = d1 if (d1 % 8 == 0 or d1 == H) else H
    in_cols = d2 if (d2 % 128 == 0 or d2 == W) else W

    itemsize = jnp.dtype(x.dtype).itemsize
    per_slab_bytes = (in_rows * in_cols + d1 * d2) * itemsize

    # Double-buffered (in + out) blocks must fit the per-generation scoped
    # VMEM; budget ~8 MiB of live blocks -> ~16 MiB with 2x buffering, which
    # is safe on v5e/v6e/v7x alike.
    b_cap = max(1, vmem_block_budget_bytes // per_slab_bytes)

    # Largest divisor of NC that fits the cap: blocks tile the batch axis
    # exactly (no ragged last block), keeping DMAs full-size.
    B = 1
    for d in range(1, NC + 1):
        if NC % d == 0 and d <= b_cap:
            B = d
    grid = (NC // B,)

    # Explicit scoped-VMEM limit: 2x buffers for in + out blocks, plus headroom.
    needed = 2 * B * per_slab_bytes
    vmem_limit = int(min(128 << 20, max(32 << 20, needed + (4 << 20))))

    out = pl.pallas_call(
        _make_trim_kernel(d1, d2),
        out_shape=jax.ShapeDtypeStruct((NC, d1, d2), x.dtype),
        grid_spec=pltpu.PrefetchScalarGridSpec(
            num_scalar_prefetch=0,
            grid=grid,
            in_specs=[
                pl.BlockSpec((B, in_rows, in_cols), lambda i: (i, 0, 0)),
            ],
            # (d1, d2) equal the full last-two dims of the output array, so
            # the (8,128) constraint is satisfied for any crop size.
            out_specs=pl.BlockSpec((B, d1, d2), lambda i: (i, 0, 0)),
        ),
        compiler_params=pltpu.CompilerParams(
            dimension_semantics=("parallel",),
            vmem_limit_bytes=vmem_limit,
        ),
    )(x2)

    return out.reshape(N, C, d1, d2)


if __name__ == "__main__":
    # Small deterministic example consistent with a conv-autoencoder feature map.
    N, C, H, W = 2, 4, 16, 16
    d1, d2 = 12, 10

    key = jax.random.PRNGKey(0)
    x = jax.random.normal(key, (N, C, H, W), dtype=jnp.float32)

    out = trim(x, d1, d2)
    out = jax.block_until_ready(out)

    # Correctness check against the plain-JAX slice (same semantics as PyTorch).
    ref = x[:, :, :d1, :d2]
    assert out.shape == (N, C, d1, d2), out.shape
    assert out.dtype == x.dtype
    assert jnp.array_equal(out, ref), "Pallas trim mismatch vs reference slice"

    print("KERNEL_OK")
</pallas_src>

<mosaic_0001>
module attributes {stable_mosaic.version = 11 : i64} {
  func.func @kernel(%arg0: i32, %arg1: memref<8x16x16xf32, #tpu.memory_space<vmem>>, %arg2: memref<8x12x10xf32, #tpu.memory_space<vmem>>) attributes {dimension_semantics = [#tpu.dimension_semantics<parallel>], iteration_bounds = array<i64: 1>, scalar_prefetch = 0 : i64, scratch_operands = 0 : i64, tpu.core_type = #tpu.core_type<tc>, window_params = [{transform_indices = @transform_0, window_bounds = array<i64: 8, 16, 16>}, {transform_indices = @transform_1, window_bounds = array<i64: 8, 12, 10>}]} {
    %c0 = arith.constant 0 : index
    %c0_0 = arith.constant 0 : index
    %c0_1 = arith.constant 0 : index
    %0 = vector.load %arg1[%c0, %c0_0, %c0_1] : memref<8x16x16xf32, #tpu.memory_space<vmem>>, vector<8x12x10xf32>
    %c0_2 = arith.constant 0 : index
    %c0_3 = arith.constant 0 : index
    %c0_4 = arith.constant 0 : index
    %1 = vector.load %arg2[%c0_2, %c0_3, %c0_4] : memref<8x12x10xf32, #tpu.memory_space<vmem>>, vector<8x12x10xf32>
    tpu.vector_store %arg2[%c0_2, %c0_3, %c0_4], %0 {strides = array<i32>} : memref<8x12x10xf32, #tpu.memory_space<vmem>>, vector<8x12x10xf32>,
    return
  }
  func.func @transform_0(%arg0: i32) -> (i32, i32, i32) {
    %c0_i32 = arith.constant 0 : i32
    %c0_i32_0 = arith.constant 0 : i32
    %c0_i32_1 = arith.constant 0 : i32
    return %arg0, %c0_i32, %c0_i32_0 : i32, i32, i32
  }
  func.func @transform_1(%arg0: i32) -> (i32, i32, i32) {
    %c0_i32 = arith.constant 0 : i32
    %c0_i32_0 = arith.constant 0 : i32
    %c0_i32_1 = arith.constant 0 : i32
    return %arg0, %c0_i32, %c0_i32_0 : i32, i32, i32
  }
}

</mosaic_0001>

<bundles_post_ra>
// kernel: tpu_custom_call.1
= control target key start
LH: loop header
LB: loop body
LE: loop exit
PB: predicated region body
PF: predicated region fallthrough
CT: control target
= control target key end

     0   :  { %6 = vsyncpa [#allocation3], 0  ;;  %s88_s6 = smov [#allocation2]   ;;  %s177_s0 = inlined_call_operand.hbm [shape: f32[8,16,16], index: 0, kind: input, shape index: {}]   ;;  %s178_s1 = inlined_call_operand.vmem [shape: f32[8,12,10], index: 1, kind: output, shape index: {}]  }
   0x1   :  { %s12_s7 = sshll.u32 %s88_s6, 4  ;;  %s64_s10 = scalar_lea.hbm %s177_s0, 2048  ;;  %s13_s7 = int_to_ptr.vmem [resolvable:$true] %s12_s7 }
   0x2   :  { %p65_p0 = scmp.ne.s32.totalorder %s177_s0, %s64_s10  ;;  %p68_p1 = scmp.lt.u32.totalorder %s64_s10, %s177_s0 }
   0x4   :  { %p70_p2 = pnand %p68_p1, %p65_p0 }
   0x6   :  { %73 = shalt.err (!%p70_p2)
}
   0x7   :  { %s74_s15 = scalar_lea.vmem %s13_s7, 2048  ;;  %p79_p4 = scmp.lt.s32.totalorder %s13_s7, %s13_s7 }
   0x8   :  { %p75_p3 = scmp.ne.s32.totalorder %s13_s7, %s74_s15  ;;  %p80_p5 = scmp.lt.s32.totalorder %s74_s15, %s74_s15 }
   0xa   :  { %p81_p6 = por %p80_p5, %p79_p4 }
   0xc   :  { %p82_p7 = pnand %p81_p6, %p75_p3 }
   0xe   :  { %85 = shalt.err (!%p82_p7)
}
   0xf   :  { %s89_s16 = smov 128   ;;  %s90_s17 = smov 8  }
  0x10   :  { %18 = dma.hbm_to_vmem [thread:$0]  %s177_s0, 2048, %s13_s7, [#allocation3], %s89_s16, %s89_s16, %s90_s17  }
  0x11   :  { %86 = dma.done.wait [#allocation3], 2048  }
  0x12   :  { %87 = vsyncadd [#allocation3], 4294965248  ;;  %vm38_vm0 = vcmask 80896   ;;  %vm40_vm1 = vcmask 76800   ;;  %v22_v0 = vld [vmem:[#allocation2] sm:$0xff]  ;;  %v24_v2 = vld [vmem:[#allocation2 + $0x10] sm:$0xff] }
  0x13   :  { %v23_v1 = vld [vmem:[#allocation2 + $0x8] sm:$0xf]  ;;  %39 = vst.msk [vmem:[%s178_s1] sm:$0xff] %vm38_vm0, %v22_v0  ;;  %42 = vst.msk [vmem:[%s178_s1 + $0x10] sm:$0xff] %vm38_vm0, %v24_v2  ;;  %v25_v3 = vld [vmem:[#allocation2 + $0x18] sm:$0xf] }
  0x14   :  { %41 = vst.msk [vmem:[%s178_s1 + $0x8] sm:$0xf] %vm40_vm1, %v23_v1  ;;  %v26_v4 = vld [vmem:[#allocation2 + $0x20] sm:$0xff]  ;;  %v27_v5 = vld [vmem:[#allocation2 + $0x28] sm:$0xf]  ;;  %v28_v6 = vld [vmem:[#allocation2 + $0x30] sm:$0xff] }
  0x15   :  { %43 = vst.msk [vmem:[%s178_s1 + $0x18] sm:$0xf] %vm40_vm1, %v25_v3  ;;  %45 = vst.msk [vmem:[%s178_s1 + $0x28] sm:$0xf] %vm40_vm1, %v27_v5  ;;  %v29_v7 = vld [vmem:[#allocation2 + $0x38] sm:$0xf] }
  0x16   :  { %44 = vst.msk [vmem:[%s178_s1 + $0x20] sm:$0xff] %vm38_vm0, %v26_v4  ;;  %v30_v8 = vld [vmem:[#allocation2 + $0x40] sm:$0xff]  ;;  %46 = vst.msk [vmem:[%s178_s1 + $0x30] sm:$0xff] %vm38_vm0, %v28_v6  ;;  %v31_v9 = vld [vmem:[#allocation2 + $0x48] sm:$0xf] }
  0x17   :  { %47 = vst.msk [vmem:[%s178_s1 + $0x38] sm:$0xf] %vm40_vm1, %v29_v7  ;;  %v32_v10 = vld [vmem:[#allocation2 + $0x50] sm:$0xff]  ;;  %v33_v11 = vld [vmem:[#allocation2 + $0x58] sm:$0xf]  ;;  %v34_v12 = vld [vmem:[#allocation2 + $0x60] sm:$0xff] }
  0x18   :  { %48 = vst.msk [vmem:[%s178_s1 + $0x40] sm:$0xff] %vm38_vm0, %v30_v8  ;;  %50 = vst.msk [vmem:[%s178_s1 + $0x50] sm:$0xff] %vm38_vm0, %v32_v10  ;;  %v35_v13 = vld [vmem:[#allocation2 + $0x68] sm:$0xf]  ;;  %v36_v14 = vld [vmem:[#allocation2 + $0x70] sm:$0xff] }
  0x19   :  { %49 = vst.msk [vmem:[%s178_s1 + $0x48] sm:$0xf] %vm40_vm1, %v31_v9  ;;  %51 = vst.msk [vmem:[%s178_s1 + $0x58] sm:$0xf] %vm40_vm1, %v33_v11  ;;  %v37_v15 = vld [vmem:[#allocation2 + $0x78] sm:$0xf] }
  0x1a   :  { %52 = vst.msk [vmem:[%s178_s1 + $0x60] sm:$0xff] %vm38_vm0, %v34_v12  ;;  %54 = vst.msk [vmem:[%s178_s1 + $0x70] sm:$0xff] %vm38_vm0, %v36_v14 }
  0x1b   :  { %53 = vst.msk [vmem:[%s178_s1 + $0x68] sm:$0xf] %vm40_vm1, %v35_v13  ;;  %55 = vst.msk [vmem:[%s178_s1 + $0x78] sm:$0xf] %vm40_vm1, %v37_v15 }
  0x1c   :  { %60 = vsyncpa [#allocation3], 1 }

</bundles_post_ra>
